<compile_context>
chip_gen: v6e
topology: v6e:2x2x1
jax: 0.10.0
libtpu: 0.0.40
codegen_flags: <defaults>
</compile_context>

<pallas_src>
import functools

import jax
import jax.numpy as jnp
from jax.experimental import pallas as pl
from jax.experimental.pallas import tpu as pltpu

LANES = 128
WIDE = 4 * LANES                       # 512-lane slab width (lane-dense stores)
_TARGET_TILE_BYTES = 2 << 20           # ~2 MiB per block buffer (in I/O dtype)
_VMEM_LIMIT_BYTES = 32 * 1024 * 1024   # explicit scoped-VMEM limit


def _softplus_kernel(scal_ref, x_ref, o_ref, *, threshold):
    """Elementwise learnable softplus on one (block_rows, width) tile.

    scal_ref : SMEM (2,) float32 scalar-prefetch ref -> [beta, 1/beta]
    x_ref    : VMEM tile, original dtype
    o_ref    : VMEM tile, original dtype
    """
    beta = scal_ref[0]
    inv_beta = scal_ref[1]
    x = x_ref[...].astype(jnp.float32)
    scaled = x * beta
    # NOTE: jnp.where evaluates both branches; for scaled >> 88, exp overflows
    # to +inf and log1p(inf) = inf, but the where() then selects `x`, so the
    # result stays finite (no NaN) -- same behavior as the torch reference.
    # TODO(synk): on v7x bf16 the two EUP transcendentals/elem can become the
    # binding slot (HBM there is ~3.2 TB/s); if profiling shows EUP saturation,
    # compute the exp at bf16 precision on that target only.
    soft = jnp.log1p(jnp.exp(scaled)) * inv_beta
    o_ref[...] = jnp.where(scaled > threshold, x, soft).astype(o_ref.dtype)


def _pick_block_rows(rows, width, itemsize, requested):
    """Choose a (8,128)-legal row-block size ~_TARGET_TILE_BYTES large."""
    sub = max(8, 32 // itemsize)          # sublane granularity for this dtype
    if rows <= sub:
        return rows                       # single full-extent block
    br = requested if requested is not None else (_TARGET_TILE_BYTES // (width * itemsize))
    br = max(sub, (min(br, rows) // sub) * sub)
    # v7x: guarantee >= 2 grid blocks so the single "parallel" axis can be
    # split across both TensorCores (only when a legal sublane split exists).
    if pl.cdiv(rows, br) == 1 and rows >= 2 * sub:
        br = (((rows + 1) // 2) + sub - 1) // sub * sub
    return br


def learnable_softplus(x, untransformed_beta, threshold=20.0, *, block_rows=None):
    """Applies softplus with a learnable scalar beta to `x` (any shape / float dtype)."""
    # PositiveTensor.get_value(): beta = softplus(raw_param) > 0.
    beta = jax.nn.softplus(jnp.asarray(untransformed_beta, jnp.float32).reshape(()))
    scalars = jnp.stack([beta, 1.0 / beta]).astype(jnp.float32)       # (2,) -> SMEM

    orig_shape = x.shape
    orig_dtype = x.dtype
    n = x.size
    itemsize = jnp.dtype(orig_dtype).itemsize

    # Slab width: prefer 512 lanes; fall back to 128 when that avoids padding.
    if n % WIDE == 0:
        width, padded = WIDE, False
    elif n % LANES == 0:
        width, padded = LANES, False
    else:
        width, padded = WIDE, True

    flat = x.reshape(-1)
    if padded:
        n_pad = pl.cdiv(n, width) * width
        flat = jnp.pad(flat, (0, n_pad - n))
    else:
        n_pad = n
    rows = n_pad // width
    x2d = flat.reshape(rows, width)

    block_rows = _pick_block_rows(rows, width, itemsize, block_rows)
    grid = (pl.cdiv(rows, block_rows),)   # ragged last block is masked by Pallas

    cost = pl.CostEstimate(
        flops=4 * n,                      # mul, cmp, select, mul
        transcendentals=2 * n,            # exp + log1p
        bytes_accessed=2 * n * itemsize,  # one read + one write in I/O dtype
    )

    out2d = pl.pallas_call(
        functools.partial(_softplus_kernel, threshold=float(threshold)),
        out_shape=jax.ShapeDtypeStruct((rows, width), orig_dtype),
        grid_spec=pltpu.PrefetchScalarGridSpec(
            num_scalar_prefetch=1,        # [beta, 1/beta] -> SMEM once, before the grid
            grid=grid,
            in_specs=[pl.BlockSpec((block_rows, width), lambda i, s: (i, 0))],
            out_specs=pl.BlockSpec((block_rows, width), lambda i, s: (i, 0)),
        ),
        compiler_params=pltpu.CompilerParams(
            dimension_semantics=("parallel",),
            vmem_limit_bytes=_VMEM_LIMIT_BYTES,
        ),
        cost_estimate=cost,
    )(scalars, x2d)

    out = out2d.reshape(-1)
    if padded:
        out = out[:n]
    return out.reshape(orig_shape)


def _reference(x, untransformed_beta, threshold=20.0):
    beta = jax.nn.softplus(jnp.asarray(untransformed_beta, jnp.float32))
    xf = x.astype(jnp.float32)
    scaled = xf * beta
    return jnp.where(scaled > threshold, xf, jnp.log1p(jnp.exp(scaled)) / beta)


if __name__ == "__main__":
    key = jax.random.PRNGKey(0)

    # Deterministic parameter init matching PositiveTensor(initial_val=1.0,
    # softplus=True): untransformed = inv_softplus(1.0) = log(exp(1) - 1).
    untransformed_beta = jnp.log(jnp.expm1(jnp.float32(1.0)))

    # Main test: small NCHW f32 activation (divisible by 512 -> wide, pad-free path).
    x = jax.random.normal(key, (2, 4, 16, 16), dtype=jnp.float32) * 10.0
    out = jax.block_until_ready(learnable_softplus(x, untransformed_beta, threshold=20.0))
    ref = _reference(x, untransformed_beta, threshold=20.0)
    assert out.shape == x.shape and out.dtype == x.dtype
    assert jnp.allclose(out, ref, atol=1e-5, rtol=1e-5)

    # 128-aligned but not 512-aligned (narrow pad-free path, multi-block grid,
    # masked ragged last row-block).
    k1 = jax.random.PRNGKey(3)
    x_nar = jax.random.normal(k1, (2, 4, 16, 14), dtype=jnp.float32) * 5.0
    out_nar = jax.block_until_ready(learnable_softplus(x_nar, untransformed_beta))
    ref_nar = _reference(x_nar, untransformed_beta)
    assert out_nar.shape == x_nar.shape and out_nar.dtype == x_nar.dtype
    assert jnp.allclose(out_nar, ref_nar, atol=1e-5, rtol=1e-5)

    # Truly ragged size (exercises the pad + un-pad fallback path).
    k2 = jax.random.PRNGKey(1)
    x_odd = jax.random.normal(k2, (2, 3, 5, 7), dtype=jnp.float32) * 5.0
    out_odd = jax.block_until_ready(learnable_softplus(x_odd, untransformed_beta))
    ref_odd = _reference(x_odd, untransformed_beta)
    assert out_odd.shape == x_odd.shape and out_odd.dtype == x_odd.dtype
    assert jnp.allclose(out_odd, ref_odd, atol=1e-5, rtol=1e-5)

    # bf16 test (original-dtype I/O; f32 math happens inside the kernel).
    k3 = jax.random.PRNGKey(2)
    x_bf = (jax.random.normal(k3, (2, 4, 32, 32), dtype=jnp.float32) * 10.0).astype(jnp.bfloat16)
    out_bf = jax.block_until_ready(learnable_softplus(x_bf, untransformed_beta))
    ref_bf = _reference(x_bf, untransformed_beta).astype(jnp.bfloat16)
    assert out_bf.shape == x_bf.shape and out_bf.dtype == x_bf.dtype
    assert jnp.allclose(out_bf.astype(jnp.float32), ref_bf.astype(jnp.float32),
                        atol=2e-2, rtol=2e-2)

    print("KERNEL_OK")
</pallas_src>

<mosaic_0001>
module attributes {stable_mosaic.version = 11 : i64} {
  func.func @_softplus_kernel(%arg0: i32, %arg1: memref<2xf32, #tpu.memory_space<smem>>, %arg2: memref<4x512xf32, #tpu.memory_space<vmem>>, %arg3: memref<4x512xf32, #tpu.memory_space<vmem>>) attributes {dimension_semantics = [#tpu.dimension_semantics<parallel>], iteration_bounds = array<i64: 1>, scalar_prefetch = 1 : i64, scratch_operands = 0 : i64, tpu.core_type = #tpu.core_type<tc>, window_params = [{transform_indices = @transform_0, window_bounds = array<i64: 4, 512>}, {transform_indices = @transform_1, window_bounds = array<i64: 4, 512>}]} {
    %c0 = arith.constant 0 : index
    %0 = memref.load %arg1[%c0] : memref<2xf32, #tpu.memory_space<smem>>
    %c1 = arith.constant 1 : index
    %1 = memref.load %arg1[%c1] : memref<2xf32, #tpu.memory_space<smem>>
    %c0_0 = arith.constant 0 : index
    %c0_1 = arith.constant 0 : index
    %2 = vector.load %arg2[%c0_0, %c0_1] : memref<4x512xf32, #tpu.memory_space<vmem>>, vector<4x512xf32>
    %3 = vector.broadcast %0 : f32 to vector<4x512xf32>
    %4 = arith.mulf %2, %3 : vector<4x512xf32>
    %5 = math.exp %4 : vector<4x512xf32>
    %6 = math.log1p %5 : vector<4x512xf32>
    %7 = vector.broadcast %1 : f32 to vector<4x512xf32>
    %8 = arith.mulf %6, %7 : vector<4x512xf32>
    %cst = arith.constant 2.000000e+01 : f32
    %9 = vector.broadcast %cst : f32 to vector<4x512xf32>
    %10 = arith.cmpf ogt, %4, %9 : vector<4x512xf32>
    %11 = arith.select %10, %2, %8 : vector<4x512xi1>, vector<4x512xf32>
    %c0_2 = arith.constant 0 : index
    %c0_3 = arith.constant 0 : index
    %12 = vector.load %arg3[%c0_2, %c0_3] : memref<4x512xf32, #tpu.memory_space<vmem>>, vector<4x512xf32>
    tpu.vector_store %arg3[%c0_2, %c0_3], %11 {strides = array<i32>} : memref<4x512xf32, #tpu.memory_space<vmem>>, vector<4x512xf32>,
    return
  }
  func.func @transform_0(%arg0: i32, %arg1: memref<2xf32, #tpu.memory_space<smem>>) -> (i32, i32) {
    %c0_i32 = arith.constant 0 : i32
    %c0_i32_0 = arith.constant 0 : i32
    return %arg0, %c0_i32 : i32, i32
  }
  func.func @transform_1(%arg0: i32, %arg1: memref<2xf32, #tpu.memory_space<smem>>) -> (i32, i32) {
    %c0_i32 = arith.constant 0 : i32
    %c0_i32_0 = arith.constant 0 : i32
    return %arg0, %c0_i32 : i32, i32
  }
}

</mosaic_0001>

<bundles_post_ra>
// kernel: tpu_custom_call.1
= control target key start
LH: loop header
LB: loop body
LE: loop exit
PB: predicated region body
PF: predicated region fallthrough
CT: control target
= control target key end

     0   :  { %s145_s9 = smov [#allocation3]   ;;  %s172_s0 = inlined_call_operand.hbm [shape: f32[2], index: 0, kind: input, shape index: {}]   ;;  %s173_s1 = inlined_call_operand.hbm [shape: f32[4,512], index: 1, kind: input, shape index: {}]   ;;  %s174_s2 = inlined_call_operand.hbm [shape: f32[4,512], index: 2, kind: output, shape index: {}]  }
   0x1   :  { %8 = dma.hbm_to_smem %s172_s0, 16, %s145_s9, [#allocation2] }
   0x2   :  { %139 = dma.done.wait [#allocation2], 16 }
   0x3   :  { %140 = vsyncadd [#allocation2], 4294967280 }
   0x4   :  { %10 = sfence }
   0x5   :  { %11 = vsyncpa [#allocation5], 0 }
   0x6   :  { %12 = vsyncpa [#allocation6], 0  ;;  %s146_s12 = smov [#allocation4]  }
   0x7   :  { %s19_s13 = sshll.u32 %s146_s12, 4  ;;  %s20_s13 = int_to_ptr.vmem [resolvable:$true] %s19_s13 }
   0x8   :  { %s107_s14 = scalar_lea.vmem %s20_s13, 256  ;;  %p112_p1 = scmp.lt.s32.totalorder %s20_s13, %s20_s13 }
   0x9   :  { %p108_p0 = scmp.ne.s32.totalorder %s20_s13, %s107_s14  ;;  %p113_p2 = scmp.lt.s32.totalorder %s107_s14, %s107_s14 }
   0xb   :  { %p114_p3 = por %p113_p2, %p112_p1 }
   0xd   :  { %p115_p4 = pnand %p114_p3, %p108_p0 }
   0xf   :  { %118 = shalt.err (!%p115_p4)
}
  0x10   :  { %22 = dma.hbm_to_vmem [thread:$0]  %s173_s1, 256, %s20_s13, [#allocation5]  }
  0x11   :  { %141 = dma.done.wait [#allocation5], 256  }
  0x12   :  { %142 = vsyncadd [#allocation5], 4294967040  ;;  %s26_s0 = sld [smem:[#allocation3]]  ;;  %v28_v0 = vld [vmem:[#allocation4] sm:$0xff]  ;;  %v29_v2 = vld [vmem:[#allocation4 + $0x8] sm:$0xff]  ;;  %s147_s17 = smov [#allocation7]  }
  0x13   :  { %s79_s1 = sld [smem:[#allocation3 + $0x1]]  ;;  %s70_s18 = sshll.u32 %s147_s17, 4  ;;  %s71_s18 = int_to_ptr.vmem [resolvable:$true] %s70_s18 }
  0x14   :  { %s119_s19 = scalar_lea.vmem %s71_s18, 256  ;;  %p124_p6 = scmp.lt.s32.totalorder %s71_s18, %s71_s18 }
  0x15   :  { %p120_p5 = scmp.ne.s32.totalorder %s71_s18, %s119_s19  ;;  %p125_p7 = scmp.lt.s32.totalorder %s119_s19, %s119_s19 }
  0x17   :  { %p126_p8 = por %p125_p7, %p124_p6 }
  0x18   :  { %v30_v1 = vstv %s26_s0 }
  0x19   :  { %v31_v3 = vmul.f32 %v30_v1, %v28_v0  ;;  %v32_v4 = vmul.f32 %v30_v1, %v29_v2  ;;  %v55_v22 = vstv %s79_s1  ;;  %p127_p9 = pnand %p126_p8, %p120_p5 }
  0x1b   :  { %v33_v5 = vmul.f32 1.442695, %v31_v3  ;;  %v35_v6 = vmul.f32 1.442695, %v32_v4  ;;  %vm58_vm2 = vcmp.gt.f32.partialorder %v31_v3, 20.0  ;;  %vm59_vm3 = vcmp.gt.f32.partialorder %v32_v4, 20.0 }
  0x1d   :  { %83 = vpow2.f32 %v33_v5 }
  0x1e   :  { %85 = vpow2.f32 %v35_v6 }
  0x2a   :  { %v84_v7 = vpop.eup %83 }
  0x2b   :  { %v86_v8 = vpop.eup %85  ;;  %v37_v9 = vadd.f32 1.0, %v84_v7  ;;  %v40_v11 = vmul.f32 -0.5, %v84_v7  ;;  %v43_v14 = vand.u32 2147483647, %v84_v7 }
  0x2c   :  { %v46_v10 = vadd.f32 1.0, %v86_v8  ;;  %v49_v12 = vmul.f32 -0.5, %v86_v8  ;;  %v52_v16 = vand.u32 2147483647, %v86_v8 }
  0x2d   :  { %87 = vlog2.f32 %v37_v9  ;;  %v41_v13 = vadd.f32 1.0, %v40_v11  ;;  %vm44_vm0 = vcmp.lt.f32.partialorder %v43_v14, 0.0004427343 }
  0x2e   :  { %89 = vlog2.f32 %v46_v10  ;;  %v50_v15 = vadd.f32 1.0, %v49_v12  ;;  %vm53_vm1 = vcmp.lt.f32.partialorder %v52_v16, 0.0004427343 }
  0x2f   :  { %v42_v17 = vmul.f32 %v84_v7, %v41_v13 }
  0x30   :  { %v51_v19 = vmul.f32 %v86_v8, %v50_v15 }
  0x3a   :  { %v88_v18 = vpop.eup %87 }
  0x3b   :  { %v90_v20 = vpop.eup %89  ;;  %v39_v21 = vmul.f32 0.6931472, %v88_v18 }
  0x3c   :  { %v48_v23 = vmul.f32 0.6931472, %v90_v20 }
  0x3d   :  { %v45_v24 = vsel %vm44_vm0, %v42_v17, %v39_v21 }
  0x3e   :  { %v56_v25 = vmul.f32 %v55_v22, %v45_v24  ;;  %v54_v26 = vsel %vm53_vm1, %v51_v19, %v48_v23 }
  0x3f   :  { %v57_v27 = vmul.f32 %v55_v22, %v54_v26 }
  0x40   :  { %v60_v28 = vsel %vm58_vm2, %v28_v0, %v56_v25 }
  0x41   :  { %62 = vst [vmem:[#allocation7] sm:$0xff] %v60_v28  ;;  %v61_v29 = vsel %vm59_vm3, %v29_v2, %v57_v27 }
  0x42   :  { %63 = vst [vmem:[#allocation7 + $0x8] sm:$0xff] %v61_v29 }
  0x43   :  { %130 = shalt.err (!%p127_p9)
}
  0x44   :  { %73 = dma.vmem_to_hbm [thread:$0]  %s71_s18, 256, %s174_s2, [#allocation6]  }
  0x45   :  { %143 = dma.done.wait [#allocation6], 256  }
  0x46   :  { %144 = vsyncadd [#allocation6], 4294967040 }
  0x47   :  { %77 = vsyncpa [#allocation5], 1 }
  0x48   :  { %78 = vsyncpa [#allocation6], 1 }

</bundles_post_ra>
